<compile_context>
chip_gen: v6e
topology: v6e:2x2x1
jax: 0.10.0
libtpu: 0.0.40
codegen_flags: <defaults>
</compile_context>

<pallas_src>
import jax
import jax.numpy as jnp
from jax.experimental import pallas as pl
from jax.experimental.pallas import tpu as pltpu

LANE = 128


def _round_up(x, m):
    return (x + m - 1) // m * m


def _device_kind():
    try:
        return jax.devices()[0].device_kind.lower()
    except Exception:
        return ""


def _is_v5():
    # v5e/v5p: 128x128 MXU tiles -> the two split layer-2 GEMMs already map to
    # full MXU tiles; block-diagonal fusion would only multiply zeros.
    return "v5" in _device_kind()


def _num_tensorcores():
    # v7x exposes 2 TensorCores per chip that a "parallel" grid axis shards over.
    return 2 if "v7" in _device_kind() else 1


# ---------------------------------------------------------------------------
# Kernels
# ---------------------------------------------------------------------------

def _layer1(in_ref, ref_ref, w1i_ref, w1r_ref, b1_ref):
    """Fused first layer (mean|log_std packed along N=2H), concat folded in:
       state @ W1 == in @ W1[:d_in] + ref @ W1[d_in:].  Returns f32 (tm, 2H)."""
    cdt = w1i_ref.dtype
    h = (jnp.dot(in_ref[...].astype(cdt), w1i_ref[...],
                 preferred_element_type=jnp.float32)
         + jnp.dot(ref_ref[...].astype(cdt), w1r_ref[...],
                   preferred_element_type=jnp.float32)
         + b1_ref[...])
    return jnp.maximum(h, 0.0)  # ReLU


def adaptor_kernel_fused(in_ref, ref_ref,
                         w1i_ref, w1r_ref, b1_ref,
                         w2_ref, b2_ref,
                         mean_ref, stdp_ref):
    """Layer-2 as one block-diagonal (2H, H+Lp) GEMM (v6e/v7x path)."""
    H = mean_ref.shape[-1]
    h = _layer1(in_ref, ref_ref, w1i_ref, w1r_ref, b1_ref)          # (tm, 2H) f32
    o = jnp.dot(h.astype(w2_ref.dtype), w2_ref[...],
                preferred_element_type=jnp.float32) + b2_ref[...]   # (tm, H+Lp)
    mean_ref[...] = o[:, :H].astype(mean_ref.dtype)
    stdp_ref[...] = jnp.exp(o[:, H:]).astype(stdp_ref.dtype)


def adaptor_kernel_split(in_ref, ref_ref,
                         w1i_ref, w1r_ref, b1_ref,
                         w2m_ref, w2s_ref, b2_ref,
                         mean_ref, stdp_ref):
    """Layer-2 as two (tm,128)@(128,128) GEMMs (v5 path: full 128^2 MXU tiles)."""
    H = mean_ref.shape[-1]
    h = _layer1(in_ref, ref_ref, w1i_ref, w1r_ref, b1_ref)          # (tm, 2H) f32
    cdt = w2m_ref.dtype
    b2 = b2_ref[...]                                                # (1, H+Lp)
    mean = jnp.dot(h[:, :H].astype(cdt), w2m_ref[...],
                   preferred_element_type=jnp.float32) + b2[:, :H]
    log_std = jnp.dot(h[:, H:].astype(cdt), w2s_ref[...],
                      preferred_element_type=jnp.float32) + b2[:, H:]
    mean_ref[...] = mean.astype(mean_ref.dtype)
    stdp_ref[...] = jnp.exp(log_std).astype(stdp_ref.dtype)


# ---------------------------------------------------------------------------
# Parameter init / packing
# ---------------------------------------------------------------------------

def init_params(key, audio_embed_dim, lm_embed_dim, hidden_size):
    """PyTorch-Linear-style init: U(-1/sqrt(fan_in), +1/sqrt(fan_in))."""
    ks = jax.random.split(key, 8)

    def lin(kw, kb, fan_in, fan_out):
        bound = 1.0 / jnp.sqrt(fan_in)
        w = jax.random.uniform(kw, (fan_in, fan_out), jnp.float32, -bound, bound)
        b = jax.random.uniform(kb, (1, fan_out), jnp.float32, -bound, bound)
        return w, b

    w1m, b1m = lin(ks[0], ks[1], audio_embed_dim, hidden_size)
    w2m, b2m = lin(ks[2], ks[3], hidden_size, hidden_size)
    w1s, b1s = lin(ks[4], ks[5], audio_embed_dim, hidden_size)
    w2s, b2s = lin(ks[6], ks[7], hidden_size, lm_embed_dim)
    return dict(w1m=w1m, b1m=b1m, w2m=w2m, b2m=b2m,
                w1s=w1s, b1s=b1s, w2s=w2s, b2s=b2s)


def pack_params(params, d_in, *, weights_dtype=jnp.bfloat16, fuse_layer2=None):
    """One-time packing into the kernel layout.

    weights_dtype: bf16 by default (MXU-native, half the weight DMA bytes).
    fuse_layer2:   None = auto (block-diagonal layer-2 on non-v5 chips).
    """
    if fuse_layer2 is None:
        fuse_layer2 = not _is_v5()
    H = params["w2m"].shape[0]
    L = params["w2s"].shape[1]
    Lp = _round_up(L, LANE)

    # Layer-1: mean|log_std fused along N = 2H; split along K at the concat seam.
    w1 = jnp.concatenate([params["w1m"], params["w1s"]], axis=1).astype(weights_dtype)
    b1 = jnp.concatenate([params["b1m"], params["b1s"]], axis=1)     # f32 (post-acc add)

    # Layer-2: pad the std head to a lane-dense Lp=128.
    w2s_p = jnp.pad(params["w2s"], ((0, 0), (0, Lp - L)))             # (H, Lp)
    b2s_p = jnp.pad(params["b2s"], ((0, 0), (0, Lp - L)))             # (1, Lp)
    b2 = jnp.concatenate([params["b2m"], b2s_p], axis=1)              # (1, H+Lp) f32

    packed = dict(w1_in=w1[:d_in], w1_ref=w1[d_in:], b1=b1, b2=b2,
                  H=H, L=L, Lp=Lp, fuse_layer2=fuse_layer2)
    if fuse_layer2:
        # Block-diagonal (2H, H+Lp): one K=256/N=256 MXU pass does both heads.
        w2 = jnp.zeros((2 * H, H + Lp), jnp.float32)
        w2 = w2.at[:H, :H].set(params["w2m"])
        w2 = w2.at[H:, H:].set(w2s_p)
        packed["w2"] = w2.astype(weights_dtype)
    else:
        packed["w2m"] = params["w2m"].astype(weights_dtype)
        packed["w2s"] = w2s_p.astype(weights_dtype)
    return packed


# ---------------------------------------------------------------------------
# Forward wrapper
# ---------------------------------------------------------------------------

def adaptor_forward(input_embed, ref_embed, packed, *, block_b=1024):
    B, d_in = input_embed.shape
    _, d_ref = ref_embed.shape
    H, L, Lp = packed["H"], packed["L"], packed["Lp"]

    # Fat row tiles amortize the ~0.35 us/step grid overhead; cap at 2048 so the
    # per-step footprint stays well inside v5e's 16 MiB scoped-VMEM default.
    tm = _round_up(min(block_b, 2048, max(B, 8)), 8)
    # v7x: make sure the "parallel" batch axis has >= 2 steps so both TCs work.
    if _num_tensorcores() >= 2:
        while tm > 8 and pl.cdiv(B, tm) < 2:
            tm = _round_up(tm // 2, 8)

    Bp = _round_up(B, tm)
    if Bp != B:
        pad = ((0, Bp - B), (0, 0))
        input_embed = jnp.pad(input_embed, pad)
        ref_embed = jnp.pad(ref_embed, pad)
    grid = (Bp // tm,)

    row_spec = lambda cols: pl.BlockSpec((tm, cols), lambda i: (i, 0))   # pipelined per step
    res_spec = lambda shape: pl.BlockSpec(shape, lambda i: (0, 0))       # resident constants

    out_shape = (jax.ShapeDtypeStruct((Bp, H), jnp.float32),
                 jax.ShapeDtypeStruct((Bp, Lp), jnp.float32))
    out_specs = (row_spec(H), row_spec(Lp))
    cparams = pltpu.CompilerParams(dimension_semantics=("parallel",))

    if packed["fuse_layer2"]:
        mean, stdp = pl.pallas_call(
            adaptor_kernel_fused,
            out_shape=out_shape,
            grid=grid,
            in_specs=[
                row_spec(d_in), row_spec(d_ref),
                res_spec((d_in, 2 * H)), res_spec((d_ref, 2 * H)), res_spec((1, 2 * H)),
                res_spec((2 * H, H + Lp)), res_spec((1, H + Lp)),
            ],
            out_specs=out_specs,
            compiler_params=cparams,
        )(input_embed, ref_embed,
          packed["w1_in"], packed["w1_ref"], packed["b1"],
          packed["w2"], packed["b2"])
    else:
        mean, stdp = pl.pallas_call(
            adaptor_kernel_split,
            out_shape=out_shape,
            grid=grid,
            in_specs=[
                row_spec(d_in), row_spec(d_ref),
                res_spec((d_in, 2 * H)), res_spec((d_ref, 2 * H)), res_spec((1, 2 * H)),
                res_spec((H, H)), res_spec((H, Lp)), res_spec((1, H + Lp)),
            ],
            out_specs=out_specs,
            compiler_params=cparams,
        )(input_embed, ref_embed,
          packed["w1_in"], packed["w1_ref"], packed["b1"],
          packed["w2m"], packed["w2s"], packed["b2"])

    return mean[:B], stdp[:B, :L]


# ---------------------------------------------------------------------------
# Demo / correctness check
# ---------------------------------------------------------------------------

if __name__ == "__main__":
    # Small shapes: concat along dim=1 implies audio_embed_dim = d_in + d_ref.
    B = 16
    d_in, d_ref = 16, 16
    audio_embed_dim = d_in + d_ref      # 32
    hidden_size = 128
    lm_embed_dim = 64

    key = jax.random.PRNGKey(0)
    k_in, k_ref, k_params = jax.random.split(key, 3)

    input_embed = jax.random.normal(k_in, (B, d_in), jnp.float32)
    ref_embed = jax.random.normal(k_ref, (B, d_ref), jnp.float32)
    params = init_params(k_params, audio_embed_dim, lm_embed_dim, hidden_size)

    # Reference in plain JAX (same math as the PyTorch module).
    state = jnp.concatenate([input_embed, ref_embed], axis=1)
    h_m = jnp.maximum(state @ params["w1m"] + params["b1m"], 0.0)
    mean_ref_v = h_m @ params["w2m"] + params["b2m"]
    h_s = jnp.maximum(state @ params["w1s"] + params["b1s"], 0.0)
    std_ref_v = jnp.exp(h_s @ params["w2s"] + params["b2s"])

    # 1) f32-weight path (bit-faithful numerics); block_b=8 -> 2-step grid,
    #    exercising the pipelined batch axis.
    packed_f32 = pack_params(params, d_in, weights_dtype=jnp.float32)
    mean32, std32 = adaptor_forward(input_embed, ref_embed, packed_f32, block_b=8)
    jax.block_until_ready((mean32, std32))
    assert mean32.shape == (B, hidden_size) and std32.shape == (B, lm_embed_dim)
    assert jnp.allclose(mean32, mean_ref_v, atol=1e-4, rtol=1e-4)
    assert jnp.allclose(std32, std_ref_v, atol=1e-4, rtol=1e-4)

    # 2) Default bf16 weight/activation path (MXU-native); looser tolerance.
    packed_bf16 = pack_params(params, d_in)
    mean16, std16 = adaptor_forward(input_embed, ref_embed, packed_bf16)
    jax.block_until_ready((mean16, std16))
    assert mean16.shape == (B, hidden_size) and std16.shape == (B, lm_embed_dim)
    assert jnp.allclose(mean16, mean_ref_v, atol=5e-2, rtol=5e-2)
    assert jnp.allclose(std16, std_ref_v, atol=5e-2, rtol=5e-2)

    print("KERNEL_OK")
</pallas_src>

<mosaic_0001>
module attributes {stable_mosaic.version = 11 : i64} {
  func.func @adaptor_kernel_fused(%arg0: i32, %arg1: memref<8x16xf32, #tpu.memory_space<vmem>>, %arg2: memref<8x16xf32, #tpu.memory_space<vmem>>, %arg3: memref<16x256xf32, #tpu.memory_space<vmem>>, %arg4: memref<16x256xf32, #tpu.memory_space<vmem>>, %arg5: memref<1x256xf32, #tpu.memory_space<vmem>>, %arg6: memref<256x256xf32, #tpu.memory_space<vmem>>, %arg7: memref<1x256xf32, #tpu.memory_space<vmem>>, %arg8: memref<8x128xf32, #tpu.memory_space<vmem>>, %arg9: memref<8x128xf32, #tpu.memory_space<vmem>>) attributes {dimension_semantics = [#tpu.dimension_semantics<parallel>], iteration_bounds = array<i64: 2>, scalar_prefetch = 0 : i64, scratch_operands = 0 : i64, tpu.core_type = #tpu.core_type<tc>, window_params = [{transform_indices = @transform_0, window_bounds = array<i64: 8, 16>}, {transform_indices = @transform_1, window_bounds = array<i64: 8, 16>}, {pipeline_mode = #tpu.pipeline_mode<synchronous>, transform_indices = @transform_2, window_bounds = array<i64: 16, 256>}, {pipeline_mode = #tpu.pipeline_mode<synchronous>, transform_indices = @transform_3, window_bounds = array<i64: 16, 256>}, {pipeline_mode = #tpu.pipeline_mode<synchronous>, transform_indices = @transform_4, window_bounds = array<i64: 1, 256>}, {pipeline_mode = #tpu.pipeline_mode<synchronous>, transform_indices = @transform_5, window_bounds = array<i64: 256, 256>}, {pipeline_mode = #tpu.pipeline_mode<synchronous>, transform_indices = @transform_6, window_bounds = array<i64: 1, 256>}, {transform_indices = @transform_7, window_bounds = array<i64: 8, 128>}, {transform_indices = @transform_8, window_bounds = array<i64: 8, 128>}]} {
    %c0 = arith.constant 0 : index
    %c0_0 = arith.constant 0 : index
    %0 = vector.load %arg1[%c0, %c0_0] : memref<8x16xf32, #tpu.memory_space<vmem>>, vector<8x16xf32>
    %c0_1 = arith.constant 0 : index
    %c0_2 = arith.constant 0 : index
    %1 = vector.load %arg3[%c0_1, %c0_2] : memref<16x256xf32, #tpu.memory_space<vmem>>, vector<16x256xf32>
    %cst = arith.constant dense<0.000000e+00> : vector<8x256xf32>
    %2 = tpu.matmul %0, %1, %cst {dimension_numbers = #tpu.dot_dimension_numbers<[1], [0], [0], [1], [0, 0, 1, 1], [], []>} : vector<8x16xf32>, vector<16x256xf32>, vector<8x256xf32> -> vector<8x256xf32>
    %c0_3 = arith.constant 0 : index
    %c0_4 = arith.constant 0 : index
    %3 = vector.load %arg2[%c0_3, %c0_4] : memref<8x16xf32, #tpu.memory_space<vmem>>, vector<8x16xf32>
    %c0_5 = arith.constant 0 : index
    %c0_6 = arith.constant 0 : index
    %4 = vector.load %arg4[%c0_5, %c0_6] : memref<16x256xf32, #tpu.memory_space<vmem>>, vector<16x256xf32>
    %cst_7 = arith.constant dense<0.000000e+00> : vector<8x256xf32>
    %5 = tpu.matmul %3, %4, %cst_7 {dimension_numbers = #tpu.dot_dimension_numbers<[1], [0], [0], [1], [0, 0, 1, 1], [], []>} : vector<8x16xf32>, vector<16x256xf32>, vector<8x256xf32> -> vector<8x256xf32>
    %6 = arith.addf %2, %5 : vector<8x256xf32>
    %c0_8 = arith.constant 0 : index
    %c0_9 = arith.constant 0 : index
    %7 = vector.load %arg5[%c0_8, %c0_9] : memref<1x256xf32, #tpu.memory_space<vmem>>, vector<1x256xf32>
    %8 = vector.broadcast %7 : vector<1x256xf32> to vector<8x256xf32>
    %9 = arith.addf %6, %8 : vector<8x256xf32>
    %cst_10 = arith.constant 0.000000e+00 : f32
    %10 = vector.broadcast %cst_10 : f32 to vector<8x256xf32>
    %11 = arith.maximumf %9, %10 : vector<8x256xf32>
    %c0_11 = arith.constant 0 : index
    %c0_12 = arith.constant 0 : index
    %12 = vector.load %arg6[%c0_11, %c0_12] : memref<256x256xf32, #tpu.memory_space<vmem>>, vector<256x256xf32>
    %cst_13 = arith.constant dense<0.000000e+00> : vector<8x256xf32>
    %13 = tpu.matmul %11, %12, %cst_13 {dimension_numbers = #tpu.dot_dimension_numbers<[1], [0], [0], [1], [0, 0, 1, 1], [], []>} : vector<8x256xf32>, vector<256x256xf32>, vector<8x256xf32> -> vector<8x256xf32>
    %c0_14 = arith.constant 0 : index
    %c0_15 = arith.constant 0 : index
    %14 = vector.load %arg7[%c0_14, %c0_15] : memref<1x256xf32, #tpu.memory_space<vmem>>, vector<1x256xf32>
    %15 = vector.broadcast %14 : vector<1x256xf32> to vector<8x256xf32>
    %16 = arith.addf %13, %15 : vector<8x256xf32>
    %17 = vector.extract_strided_slice %16 {offsets = [0, 0], sizes = [8, 128], strides = [1, 1]} : vector<8x256xf32> to vector<8x128xf32>
    %c0_16 = arith.constant 0 : index
    %c0_17 = arith.constant 0 : index
    %18 = vector.load %arg8[%c0_16, %c0_17] : memref<8x128xf32, #tpu.memory_space<vmem>>, vector<8x128xf32>
    tpu.vector_store %arg8[%c0_16, %c0_17], %17 {strides = array<i32>} : memref<8x128xf32, #tpu.memory_space<vmem>>, vector<8x128xf32>,
    %19 = vector.extract_strided_slice %16 {offsets = [0, 128], sizes = [8, 128], strides = [1, 1]} : vector<8x256xf32> to vector<8x128xf32>
    %20 = math.exp %19 : vector<8x128xf32>
    %c0_18 = arith.constant 0 : index
    %c0_19 = arith.constant 0 : index
    %21 = vector.load %arg9[%c0_18, %c0_19] : memref<8x128xf32, #tpu.memory_space<vmem>>, vector<8x128xf32>
    tpu.vector_store %arg9[%c0_18, %c0_19], %20 {strides = array<i32>} : memref<8x128xf32, #tpu.memory_space<vmem>>, vector<8x128xf32>,
    return
  }
  func.func @transform_0(%arg0: i32) -> (i32, i32) {
    %c0_i32 = arith.constant 0 : i32
    %c0_i32_0 = arith.constant 0 : i32
    return %arg0, %c0_i32 : i32, i32
  }
  func.func @transform_1(%arg0: i32) -> (i32, i32) {
    %c0_i32 = arith.constant 0 : i32
    %c0_i32_0 = arith.constant 0 : i32
    return %arg0, %c0_i32 : i32, i32
  }
  func.func @transform_2(%arg0: i32) -> (i32, i32) {
    %c0_i32 = arith.constant 0 : i32
    %c0_i32_0 = arith.constant 0 : i32
    %c0_i32_1 = arith.constant 0 : i32
    return %c0_i32, %c0_i32_0 : i32, i32
  }
  func.func @transform_3(%arg0: i32) -> (i32, i32) {
    %c0_i32 = arith.constant 0 : i32
    %c0_i32_0 = arith.constant 0 : i32
    %c0_i32_1 = arith.constant 0 : i32
    return %c0_i32, %c0_i32_0 : i32, i32
  }
  func.func @transform_4(%arg0: i32) -> (i32, i32) {
    %c0_i32 = arith.constant 0 : i32
    %c0_i32_0 = arith.constant 0 : i32
    %c0_i32_1 = arith.constant 0 : i32
    return %c0_i32, %c0_i32_0 : i32, i32
  }
  func.func @transform_5(%arg0: i32) -> (i32, i32) {
    %c0_i32 = arith.constant 0 : i32
    %c0_i32_0 = arith.constant 0 : i32
    %c0_i32_1 = arith.constant 0 : i32
    return %c0_i32, %c0_i32_0 : i32, i32
  }
  func.func @transform_6(%arg0: i32) -> (i32, i32) {
    %c0_i32 = arith.constant 0 : i32
    %c0_i32_0 = arith.constant 0 : i32
    %c0_i32_1 = arith.constant 0 : i32
    return %c0_i32, %c0_i32_0 : i32, i32
  }
  func.func @transform_7(%arg0: i32) -> (i32, i32) {
    %c0_i32 = arith.constant 0 : i32
    %c0_i32_0 = arith.constant 0 : i32
    return %arg0, %c0_i32 : i32, i32
  }
  func.func @transform_8(%arg0: i32) -> (i32, i32) {
    %c0_i32 = arith.constant 0 : i32
    %c0_i32_0 = arith.constant 0 : i32
    return %arg0, %c0_i32 : i32, i32
  }
}

</mosaic_0001>

<bundles_post_ra>
// kernel: tpu_custom_call.1
= control target key start
LH: loop header
LB: loop body
LE: loop exit
PB: predicated region body
PF: predicated region fallthrough
CT: control target
= control target key end

     0   :  { %s1608_s0 = inlined_call_operand.hbm [shape: f32[16,16], index: 0, kind: input, shape index: {}]   ;;  %s1609_s1 = inlined_call_operand.hbm [shape: f32[16,16], index: 1, kind: input, shape index: {}]   ;;  %s1610_s2 = inlined_call_operand.hbm [shape: f32[16,256], index: 2, kind: input, shape index: {}]   ;;  %s1611_s3 = inlined_call_operand.hbm [shape: f32[16,256], index: 3, kind: input, shape index: {}]   ;;  %s1612_s4 = inlined_call_operand.vmem [shape: f32[1,256], index: 4, kind: input, shape index: {}]   ;;  %s1613_s5 = inlined_call_operand.hbm [shape: f32[256,256], index: 5, kind: input, shape index: {}]   ;;  %s1614_s6 = inlined_call_operand.vmem [shape: f32[1,256], index: 6, kind: input, shape index: {}]   ;;  %s1615_s7 = inlined_call_operand.hbm [shape: f32[16,128], index: 7, kind: output, shape index: {0}]   ;;  %s1616_s8 = inlined_call_operand.hbm [shape: f32[16,128], index: 8, kind: output, shape index: {1}]  }
   0x1   :  { %1622 = sst [smem:[#allocation22_spill]] %s1610_s2 }
   0x2   :  { %1623 = sst [smem:[#allocation23_spill]] %s1611_s3 }
   0x3   :  { %1624 = sst [smem:[#allocation24_spill]] %s1613_s5 }
   0x4   :  { %14 = vsyncpa [#allocation3], 0 }
   0x5   :  { %16 = vsyncpa [#allocation3 + $0x1], 0 }
   0x6   :  { %17 = vsyncpa [#allocation6], 0 }
   0x7   :  { %19 = vsyncpa [#allocation6 + $0x1], 0 }
   0x8   :  { %20 = vsyncpa [#allocation9], 0 }
   0x9   :  { %21 = vsyncpa [#allocation4], 0 }
   0xa   :  { %23 = vsyncpa [#allocation4 + $0x1], 0 }
   0xb   :  { %24 = vsyncpa [#allocation13], 0 }
   0xc   :  { %26 = vsyncpa [#allocation13 + $0x1], 0  ;;  %s1338_s27 = smov 0   ;;  %s1340_s28 = smov 0  }
   0xd   :  { %s1342_s29 = smov 0   ;;  %s1344_s30 = smov 0  }
   0xe LB: > { %1625 = sst [smem:[#allocation20_spill]] %s1277_s29  ;;  %s1359_s9 = sadd.s32 4294967295, %s1281_s30   ;;  %s1281_s30 = sphi %s1344_s30, %s1650_s30   ;;  %s1277_s29 = sphi %s1342_s29, %s1647_s29   ;;  %s1273_s28 = sphi %s1340_s28, %s1649_s28   ;;  %s1269_s27 = sphi %s1338_s27, %s1648_s27  }
   0xf   : > { %s923_s10 = sadd.s32 4294967294, %s1281_s30   ;;  %p52_p0 = scmp.ne.s32.totalorder %s1273_s28, %s1269_s27 }
  0x10   : > { %p1617_p1 = scmp.eq.s32.totalorder %s1359_s9, 0  ;;  %p213_p3 = scmp.eq.s32.totalorder %s923_s10, 1 }
  0x11   : > { %p924_p5 = scmp.ge.s32.totalorder %s1281_s30, 1  ;;  %p246_p7 = scmp.lt.s32.totalorder %s1281_s30, 3 }
  0x12   : > { %p1368_p4 = por %p1617_p1, %p52_p0  ;;  %p1373_p6 = por %p213_p3, %p52_p0 }
  0x13   : > { %p1378_p8 = pnand %p924_p5, %p246_p7  ;;  %s1283_s14 = smov [#allocation7]  }
  0x14   : > { %s1626_s11 = scalar_select %p1368_p4, 1, 0 }
  0x15   : > { %s1627_s12 = scalar_select %p1373_p6, 1, 0 }
  0x16   : > { %s1628_s13 = scalar_select %p1378_p8, 1, 0 }
  0x17   : > { %s258_s15 = sshll.u32 %s1283_s14, 4  ;;  %p969_p9 = pneg %p1378_p8  ;;  %s259_s15 = int_to_ptr.vmem [resolvable:$true] %s258_s15 }
  0x18   : > { %s1284_s17 = smov [#allocation8]   ;;  %s1285_s19 = smov [#allocation10]  }
  0x19   : > { %p1387_p11 = pnand %p969_p9, %p1617_p1  ;;  %s271_s18 = sshll.u32 %s1284_s17, 4  ;;  %s272_s18 = int_to_ptr.vmem [resolvable:$true] %s271_s18 }
  0x1a   : > { %s287_s20 = sshll.u32 %s1285_s19, 4  ;;  %s1052_s21 = scalar_lea.vmem %s259_s15, 512  ;;  %s288_s20 = int_to_ptr.vmem [resolvable:$true] %s287_s20 }
  0x1b   : > { %p1043_p12 = pneg %p1387_p11  ;;  %p1053_p13 = scmp.ne.s32.totalorder %s259_s15, %s1052_s21 }
  0x1c   : > { %p1060_p5 = scmp.lt.s32.totalorder %s259_s15, %s259_s15  ;;  %p1061_p7 = scmp.lt.s32.totalorder %s1052_s21, %s1052_s21 }
  0x1d   : > { %p1055_p0 = pnand %p1053_p13, %p1043_p12 }
  0x1e   : > { %p1062_p9 = por %p1061_p7, %p1060_p5 }
  0x1f   : > { %p1056_p3 = pneg %p1055_p0 }
  0x21   : > { %p1063_p10 = pnand %p1062_p9, %p1056_p3 }
  0x23   : > { %1066 = shalt.err (!%p1063_p10)
}
  0x24   : > { %s1286_s22 = smov 256   ;;  %s1287_s23 = smov 16  }
  0x25   : > { %s1630_s2 = sld [smem:[#allocation22_spill]]  ;;  %s1078_s26 = scalar_lea.vmem %s272_s18, 512 }
  0x26   : > { %p1079_p1 = scmp.ne.s32.totalorder %s272_s18, %s1078_s26  ;;  %p1086_p2 = scmp.lt.s32.totalorder %s272_s18, %s272_s18 }
  0x27   : > { %p1087_p6 = scmp.lt.s32.totalorder %s1078_s26, %s1078_s26 }
  0x28   : > { %p1081_p13 = pnand %p1079_p1, %p1043_p12 }
  0x29   : > { %p1088_p5 = por %p1087_p6, %p1086_p2 }
  0x2a   : > { %p1082_p0 = pneg %p1081_p13 }
  0x2b   : > { %972 = dma.hbm_to_vmem [thread:$0]  (!%p1387_p11), %s1630_s2, 512, %s259_s15, [#allocation6], %s1286_s22, %s1286_s22, %s1287_s23  }
  0x2c   : > { %p1089_p3 = pnand %p1088_p5, %p1082_p0 }
  0x2e   : > { %1092 = shalt.err (!%p1089_p3)
}
  0x2f   : > { %s1631_s3 = sld [smem:[#allocation23_spill]]  ;;  %s1104_s15 = scalar_lea.vmem %s288_s20, 8192 }
  0x30   : > { %p1105_p10 = scmp.ne.s32.totalorder %s288_s20, %s1104_s15  ;;  %p1112_p9 = scmp.lt.s32.totalorder %s288_s20, %s288_s20 }
  0x31   : > { %p1113_p13 = scmp.lt.s32.totalorder %s1104_s15, %s1104_s15 }
  0x32   : > { %p1107_p7 = pnand %p1105_p10, %p1043_p12 }
  0x33   : > { %p1114_p4 = por %p1113_p13, %p1112_p9 }
  0x34   : > { %p1108_p1 = pneg %p1107_p7 }
  0x35   : > { %975 = dma.hbm_to_vmem [thread:$0]  (!%p1387_p11), %s1631_s3, 512, %s272_s18, [#allocation9], %s1286_s22, %s1286_s22, %s1287_s23  }
  0x36   : > { %p1115_p2 = pnand %p1114_p4, %p1108_p1 }
  0x38   : > { %1118 = shalt.err (!%p1115_p2)
}
  0x39   : > { %s1632_s5 = sld [smem:[#allocation24_spill]]  ;;  %s1418_s18 = sadd.s32 1, %s1281_s30  }
  0x3a   : > { %s36_s21 = ssub.s32 %s1281_s30, %s1418_s18  ;;  %s39_s16 = sadd.s32 1, %s1277_s29 }
  0x3b   : > { %p37_p4 = scmp.eq.s32.totalorder %s36_s21, 0  ;;  %p46_p6 = scmp.ne.s32.totalorder %s1277_s29, %s1273_s28 }
  0x3c   : > { %p47_p12 = scmp.eq.s32.totalorder %s1281_s30, 0  ;;  %p996_p0 = scmp.lt.s32.totalorder %s1281_s30, 2 }
  0x3d   : > { %s1428_s24 = scalar_select %p37_p4, %s1277_s29, %s39_s16  }
  0x3e   : > { %p48_p5 = por %p47_p12, %p46_p6  ;;  %p1634_p3 = scmp.eq.s32.totalorder %s1359_s9, 1 }
  0x3f   : > { %978 = dma.hbm_to_vmem [thread:$0]  (!%p1387_p11), %s1632_s5, 8192, %s288_s20, [#allocation9], %s1286_s22, %s1286_s22, %s1287_s23  }
  0x40   : > { %1633 = sst [smem:[#allocation21_spill]] %s1428_s24  ;;  %p1432_p10 = por %p1634_p3, %p46_p6 }
  0x41   : > { %s304_s26 = sand.u32 1, %s1277_s29   ;;  %s930_s10 = sshll.u32 %s1281_s30, 7 }
  0x42   : > { %s1635_s25 = scalar_select %p1432_p10, 1, 0 }
  0x43   : > { %s1438_s20 = sshll.u32 %s304_s26, 3  ;;  %s1443_s14 = scalar_lea.hbm %s1608_s0, %s930_s10 }
  0x44   : > { %s308_s15 = scalar_lea.vmem [#allocation2], %s1438_s20  ;;  %p1446_p11 = pnand %p996_p0, %p48_p5 }
  0x45   : > { %s315_s17 = sshll.u32 %s308_s15, 4  ;;  %s1453_s2 = scalar_lea.hbm %s1609_s1, %s930_s10  ;;  %s316_s17 = int_to_ptr.vmem [resolvable:$true] %s315_s17 }
  0x46   : > { %s305_s22 = scalar_lea.sflag [#allocation3], %s304_s26  ;;  %s1119_s23 = scalar_lea.hbm %s1443_s14, 128 }
  0x47   : > { %p1120_p7 = scmp.ne.s32.totalorder %s1443_s14, %s1119_s23  ;;  %p1121_p1 = pneg %p1446_p11 }
  0x48   : > { %s1124_s5 = scalar_lea.hbm %s1608_s0, 256  ;;  %p1125_p2 = scmp.lt.s32.totalorder %s1443_s14, %s1608_s0 }
  0x49   : > { %p1122_p9 = pnand %p1121_p1, %p1120_p7  ;;  %p1126_p4 = scmp.lt.s32.totalorder %s1124_s5, %s1119_s23 }
  0x4b   : > { %p1123_p13 = pneg %p1122_p9  ;;  %p1127_p6 = por %p1126_p4, %p1125_p2 }
  0x4d   : > { %p1128_p12 = pnand %p1127_p6, %p1123_p13 }
  0x4f   : > { %1131 = shalt.err (!%p1128_p12)
}
  0x50   : > { %s1132_s26 = scalar_lea.vmem %s316_s17, 128  ;;  %s1288_s10 = smov [#allocation2]  }
  0x51   : > { %p1133_p0 = scmp.ne.s32.totalorder %s316_s17, %s1132_s26  ;;  %s1137_s21 = sshll.u32 %s1288_s10, 4  ;;  %s1138_s21 = int_to_ptr.vmem [resolvable:$false] %s1137_s21 }
  0x52   : > { %s1139_s3 = scalar_lea.vmem %s1138_s21, 256  ;;  %p1140_p7 = scmp.lt.s32.totalorder %s316_s17, %s1138_s21 }
  0x53   : > { %p1135_p5 = pnand %p1133_p0, %p1121_p1  ;;  %p1141_p9 = scmp.lt.s32.totalorder %s1139_s3, %s1132_s26 }
  0x55   : > { %p1136_p3 = pneg %p1135_p5  ;;  %p1142_p10 = por %p1141_p9, %p1140_p7 }
  0x57   : > { %p1143_p8 = pnand %p1142_p10, %p1136_p3 }
  0x59   : > { %1146 = shalt.err (!%p1143_p8)
}
  0x5a   : > { %982 = dma.hbm_to_vmem [thread:$0]  (!%p1446_p11), %s1443_s14, 128, %s316_s17, %s305_s22  }
  0x5b   : > { %s322_s5 = sand.u32 1, %s1281_s30   ;;  %s326_s29 = scalar_lea.vmem [#allocation5], %s1438_s20 }
  0x5c   : > { %s333_s24 = sshll.u32 %s326_s29, 4  ;;  %s323_s16 = scalar_lea.sflag [#allocation6], %s322_s5  ;;  %s334_s24 = int_to_ptr.vmem [resolvable:$true] %s333_s24 }
  0x5d   : > { %s1147_s23 = scalar_lea.hbm %s1453_s2, 128  ;;  %s1152_s10 = scalar_lea.hbm %s1609_s1, 256 }
  0x5e   : > { %p1148_p13 = scmp.ne.s32.totalorder %s1453_s2, %s1147_s23  ;;  %p1153_p2 = scmp.lt.s32.totalorder %s1453_s2, %s1609_s1 }
  0x5f   : > { %p1154_p4 = scmp.lt.s32.totalorder %s1152_s10, %s1147_s23 }
  0x60   : > { %p1150_p8 = pnand %p1148_p13, %p1121_p1 }
  0x61   : > { %p1155_p6 = por %p1154_p4, %p1153_p2 }
  0x62   : > { %p1151_p10 = pneg %p1150_p8 }
  0x64   : > { %p1156_p12 = pnand %p1155_p6, %p1151_p10 }
  0x66   : > { %1159 = shalt.err (!%p1156_p12)
}
  0x67   : > { %s1160_s20 = scalar_lea.vmem %s334_s24, 128  ;;  %s1289_s14 = smov [#allocation5]  }
  0x68   : > { %p1161_p0 = scmp.ne.s32.totalorder %s334_s24, %s1160_s20  ;;  %s1165_s17 = sshll.u32 %s1289_s14, 4  ;;  %s1166_s17 = int_to_ptr.vmem [resolvable:$false] %s1165_s17 }
  0x69   : > { %s1167_s22 = scalar_lea.vmem %s1166_s17, 256  ;;  %p1168_p7 = scmp.lt.s32.totalorder %s334_s24, %s1166_s17 }
  0x6a   : > { %p1163_p5 = pnand %p1161_p0, %p1121_p1  ;;  %p1169_p9 = scmp.lt.s32.totalorder %s1167_s22, %s1160_s20 }
  0x6c   : > { %p1164_p3 = pneg %p1163_p5  ;;  %p1170_p13 = por %p1169_p9, %p1168_p7 }
  0x6e   : > { %p1171_p8 = pnand %p1170_p13, %p1164_p3 }
  0x70   : > { %1174 = shalt.err (!%p1171_p8)
}
  0x71   : > { %985 = dma.hbm_to_vmem [thread:$0]  (!%p1446_p11), %s1453_s2, 128, %s334_s24, %s323_s16  }
  0x72   : > { %p1637_p10 = scmp.ne.s32.totalorder %s1628_s13, 0 }
  0x73   : > { %s1498_s5 = sand.u32 (!%p1637_p10), 1, %s1273_s28   ;;  %p1638_p1 = scmp.ne.s32.totalorder (!%p1637_p10), %s1626_s11, 0 }
  0x74   : > { %342 = sbr.rel (%p1637_p10) target bundleno = 579 (0x243), region = 48  ;;  %s1501_s29 = sshll.u32 (!%p1637_p10), %s1498_s5, 3 }
  0x75   : > { %s345_s23 = scalar_lea.sflag (!%p1637_p10), [#allocation3], %s1498_s5  ;;  %s348_s15 = scalar_lea.vmem (!%p1637_p10), [#allocation2], %s1501_s29 }
  0x79   : > { %1244 = dma.done.wait (%p1638_p1), %s345_s23, 128  }
  0x7a   : > { %1246 = vsyncadd (%p1638_p1), %s345_s23, 4294967168  ;;  %s353_s2 = sand.u32 1, %s1359_s9   ;;  %s357_s19 = scalar_lea.vmem [#allocation5], %s1501_s29 }
  0x7b   : > { %s354_s13 = scalar_lea.sflag [#allocation6], %s353_s2 }
  0x7c   : > { %1248 = dma.done.wait (%p1638_p1), %s354_s13, 128  }
  0x7d   : > { %1250 = vsyncadd (%p1638_p1), %s354_s13, 4294967168  ;;  %p1639_p11 = scmp.eq.s32.totalorder %s1359_s9, 0 }
  0x7f   : > { %1252 = dma.done.wait (%p1639_p11), [#allocation6], 512   ;;  %p1640_p2 = pmov %p1639_p11 }
  0x81   : > { %1254 = vsyncadd (%p1640_p2), [#allocation6], 4294966784  ;;  %p1641_p4 = pmov %p1640_p2 }
  0x82   : > { %p1642_p6 = pmov %p1640_p2 }
  0x83   : > { %1256 = dma.done.wait (%p1641_p4), [#allocation9], 8704  }
  0x84   : > { %1258 = vsyncadd (%p1642_p6), [#allocation9], 4294958592  ;;  %v1290_v0 = vmov 0.0   ;;  %v421_v1 = vld [vmem:[#allocation8 + $0x18] sm:$0xff]  ;;  %v420_v2 = vld [vmem:[#allocation8 + $0x10] sm:$0xff]  ;;  %vm422_vm0 = vcmask 130048  }
  0x85   : > { %490 = vmatprep.mubr.f32.mxu1 %v1290_v0  ;;  %v419_v3 = vld [vmem:[#allocation8 + $0x8] sm:$0xff]  ;;  %454 = vmatprep.subr.mxu1 %v421_v1  ;;  %v418_v4 = vld [vmem:[#allocation8] sm:$0xff]  ;;  %v417_v5 = vld [vmem:[%s357_s19] sm:$0xff]  ;;  %s945_s10 = sshll.u32 %s1359_s9, 7  ;;  %s404_s21 = scalar_lea.vmem [#allocation11], %s1501_s29 }
  0x86   : > { %455 = vmatpush1.msra.mxu1 %v420_v2  ;;  %v416_v6 = vld [vmem:[#allocation7 + $0x18] sm:$0xff]  ;;  %v415_v7 = vld [vmem:[#allocation7 + $0x10] sm:$0xff]  ;;  %v414_v9 = vld [vmem:[#allocation7 + $0x8] sm:$0xff]  ;;  %s757_s3 = sshll.u32 %s404_s21, 4  ;;  %s1540_s17 = scalar_lea.hbm %s1615_s7, %s945_s10  ;;  %s1542_s3 = int_to_ptr.vmem [resolvable:$true] %s757_s3 }
  0x87   : > { %456 = vmatprep.subr.mxu1 %v419_v3  ;;  %v618_v8 = vld [vmem:[#allocation10 + $0xf8] sm:$0xff]  ;;  %v617_v10 = vld [vmem:[#allocation10 + $0xf0] sm:$0xff]  ;;  %v413_v11 = vld [vmem:[#allocation7] sm:$0xff]  ;;  %s739_s22 = scalar_lea.sflag [#allocation4], %s1498_s5  ;;  %s1175_s23 = scalar_lea.vmem %s1542_s3, 128 }
  0x88   : > { %457 = vmatpush1.msra.mxu1 %v418_v4  ;;  %663 = vmatprep.subr.mxu0 %v618_v8  ;;  %v616_v12 = vld [vmem:[#allocation10 + $0xe8] sm:$0xff]  ;;  %v615_v14 = vld [vmem:[#allocation10 + $0xe0] sm:$0xff]  ;;  %v614_v15 = vld [vmem:[#allocation10 + $0xd8] sm:$0xff]  ;;  %p1176_p12 = scmp.ne.s32.totalorder %s1542_s3, %s1175_s23  ;;  %p1643_p0 = scmp.ne.s32.totalorder %s1635_s25, 0 }
  0x89   : > { %941 = vmatmul.mubr.msk.f32.vlgmr.msra.gmra.mxu1 %vm422_vm0, %v417_v5  ;;  %528 = vmatprep.subr.mxu1 %v416_v6  ;;  %v412_v13 = vld [vmem:[%s348_s15] sm:$0xff]  ;;  %v613_v16 = vld [vmem:[#allocation10 + $0xd0] sm:$0xff]  ;;  %v610_v19 = vld [vmem:[#allocation10 + $0xb8] sm:$0xff]  ;;  %s1291_s15 = smov [#allocation11]  }
  0x8a   : > { %529 = vmatpush1.msra.mxu1 %v415_v7  ;;  %564 = vmatprep.mubr.f32.mxu1 %v1290_v0  ;;  %v612_v17 = vld [vmem:[#allocation10 + $0xc8] sm:$0xff]  ;;  %v611_v18 = vld [vmem:[#allocation10 + $0xc0] sm:$0xff]  ;;  %v609_v20 = vld [vmem:[#allocation10 + $0xb0] sm:$0xff]  ;;  %p1177_p5 = pnand %p1176_p12, %p1643_p0  ;;  %s1179_s2 = sshll.u32 %s1291_s15, 4  ;;  %s1180_s2 = int_to_ptr.vmem [resolvable:$false] %s1179_s2 }
  0x8b   : > { %530 = vmatprep.subr.mxu1 %v414_v9  ;;  %664 = vmatpush1.msra.mxu0 %v617_v10  ;;  %v608_v21 = vld [vmem:[#allocation10 + $0xa8] sm:$0xff]  ;;  %v607_v22 = vld [vmem:[#allocation10 + $0xa0] sm:$0xff]  ;;  %v606_v23 = vld [vmem:[#allocation10 + $0x98] sm:$0xff]  ;;  %s1181_s13 = scalar_lea.vmem %s1180_s2, 256  ;;  %p1182_p7 = scmp.lt.s32.totalorder %s1542_s3, %s1180_s2 }
  0x8c   : > { %531 = vmatpush1.msra.mxu1 %v413_v11  ;;  %665 = vmatprep.subr.mxu0 %v616_v12  ;;  %v605_v24 = vld [vmem:[#allocation10 + $0x90] sm:$0xff]  ;;  %v604_v25 = vld [vmem:[#allocation10 + $0x88] sm:$0xff]  ;;  %v603_v26 = vld [vmem:[#allocation10 + $0x80] sm:$0xff]  ;;  %v573_v11 = vlaneseq  ;;  %p1178_p3 = pneg %p1177_p5  ;;  %p1183_p9 = scmp.lt.s32.totalorder %s1181_s13, %s1175_s23 }
  0x8d   : > { %942 = vmatmul.mubr.msk.f32.vlgmr.msra.gmra.mxu1 %vm422_vm0, %v412_v13  ;;  %666 = vmatpush1.msra.mxu0 %v615_v14  ;;  %v602_v27 = vld [vmem:[#allocation10 + $0x78] sm:$0xff]  ;;  %v601_v28 = vld [vmem:[#allocation10 + $0x70] sm:$0xff]  ;;  %v600_v29 = vld [vmem:[#allocation10 + $0x68] sm:$0xff] }
  0x8e   : > { %667 = vmatprep.subr.mxu0 %v614_v15  ;;  %v599_v30 = vld [vmem:[#allocation10 + $0x60] sm:$0xff]  ;;  %v598_v31 = vld [vmem:[#allocation10 + $0x58] sm:$0xff]  ;;  %v597_v32 = vld [vmem:[#allocation10 + $0x50] sm:$0xff]  ;;  %v574_v12 = vshrl.u32 %v573_v11, 7  ;;  %p1184_p13 = por %p1183_p9, %p1182_p7 }
  0x8f   : > { %668 = vmatpush1.msra.mxu0 %v613_v16  ;;  %v596_v33 = vld [vmem:[#allocation10 + $0x48] sm:$0xff]  ;;  %v595_v34 = vld [vmem:[#allocation10 + $0x40] sm:$0xff]  ;;  %v594_v35 = vld [vmem:[#allocation10 + $0x38] sm:$0xff] }
  0x90   : > { %669 = vmatprep.subr.mxu0 %v612_v17  ;;  %v593_v36 = vld [vmem:[#allocation10 + $0x30] sm:$0xff]  ;;  %v592_v37 = vld [vmem:[#allocation10 + $0x28] sm:$0xff]  ;;  %v591_v38 = vld [vmem:[#allocation10 + $0x20] sm:$0xff]  ;;  %v575_v14 = vsub.s32 0, %v574_v12  ;;  %v579_v16 = vsub.s32 1, %v574_v12  ;;  %p1185_p8 = pnand %p1184_p13, %p1178_p3 }
  0x91   : > { %670 = vmatpush1.msra.mxu0 %v611_v18  ;;  %v590_v39 = vld [vmem:[#allocation10 + $0x18] sm:$0xff]  ;;  %v589_v40 = vld [vmem:[#allocation10 + $0x10] sm:$0xff]  ;;  %v588_v41 = vld [vmem:[#allocation10 + $0x8] sm:$0xff] }
  0x92   : > { %671 = vmatprep.subr.mxu0 %v610_v19  ;;  %v587_v42 = vld [vmem:[#allocation10] sm:$0xff]  ;;  %v650_v43 = vld [vmem:[#allocation10 + $0x1f8] sm:$0xff]  ;;  %v649_v44 = vld [vmem:[#allocation10 + $0x1f0] sm:$0xff] }
  0x93   : > { %672 = vmatpush1.msra.mxu0 %v609_v20  ;;  %v648_v45 = vld [vmem:[#allocation10 + $0x1e8] sm:$0xff]  ;;  %v647_v46 = vld [vmem:[#allocation10 + $0x1e0] sm:$0xff]  ;;  %v646_v47 = vld [vmem:[#allocation10 + $0x1d8] sm:$0xff] }
  0x94   : > { %673 = vmatprep.subr.mxu0 %v608_v21  ;;  %v645_v48 = vld [vmem:[#allocation10 + $0x1d0] sm:$0xff]  ;;  %v644_v49 = vld [vmem:[#allocation10 + $0x1c8] sm:$0xff]  ;;  %v643_v50 = vld [vmem:[#allocation10 + $0x1c0] sm:$0xff] }
  0x95   : > { %674 = vmatpush1.msra.mxu0 %v607_v22  ;;  %v642_v51 = vld [vmem:[#allocation10 + $0x1b8] sm:$0xff]  ;;  %v641_v52 = vld [vmem:[#allocation10 + $0x1b0] sm:$0xff]  ;;  %v640_v53 = vld [vmem:[#allocation10 + $0x1a8] sm:$0xff] }
  0x96   : > { %675 = vmatprep.subr.mxu0 %v606_v23  ;;  %v639_v54 = vld [vmem:[#allocation10 + $0x1a0] sm:$0xff]  ;;  %v638_v55 = vld [vmem:[#allocation10 + $0x198] sm:$0xff]  ;;  %v637_v56 = vld [vmem:[#allocation10 + $0x190] sm:$0xff] }
  0x97   : > { %676 = vmatpush1.msra.mxu0 %v605_v24  ;;  %v636_v57 = vld [vmem:[#allocation10 + $0x188] sm:$0xff]  ;;  %v635_v58 = vld [vmem:[#allocation10 + $0x180] sm:$0xff]  ;;  %v634_v59 = vld [vmem:[#allocation10 + $0x178] sm:$0xff] }
  0x98   : > { %677 = vmatprep.subr.mxu0 %v604_v25  ;;  %v633_v60 = vld [vmem:[#allocation10 + $0x170] sm:$0xff]  ;;  %v632_v61 = vld [vmem:[#allocation10 + $0x168] sm:$0xff]  ;;  %v631_v62 = vld [vmem:[#allocation10 + $0x160] sm:$0xff] }
  0x99   : > { %678 = vmatpush1.msra.mxu0 %v603_v26  ;;  %v630_v63 = vld [vmem:[#allocation10 + $0x158] sm:$0xff]  ;;  %v629_v0 = vld [vmem:[#allocation10 + $0x150] sm:$0xff]  ;;  %v628_v1 = vld [vmem:[#allocation10 + $0x148] sm:$0xff] }
  0x9a   : > { %679 = vmatprep.subr.mxu0 %v602_v27  ;;  %v627_v2 = vld [vmem:[#allocation10 + $0x140] sm:$0xff]  ;;  %v626_v3 = vld [vmem:[#allocation10 + $0x138] sm:$0xff]  ;;  %v625_v4 = vld [vmem:[#allocation10 + $0x130] sm:$0xff] }
  0x9b   : > { %680 = vmatpush1.msra.mxu0 %v601_v28  ;;  %v624_v5 = vld [vmem:[#allocation10 + $0x128] sm:$0xff]  ;;  %v623_v6 = vld [vmem:[#allocation10 + $0x120] sm:$0xff]  ;;  %v622_v7 = vld [vmem:[#allocation10 + $0x118] sm:$0xff] }
  0x9c   : > { %681 = vmatprep.subr.mxu0 %v600_v29  ;;  %v621_v8 = vld [vmem:[#allocation10 + $0x110] sm:$0xff]  ;;  %v620_v9 = vld [vmem:[#allocation10 + $0x108] sm:$0xff]  ;;  %v619_v10 = vld [vmem:[#allocation10 + $0x100] sm:$0xff] }
  0x9d   : > { %682 = vmatpush1.msra.mxu0 %v599_v30  ;;  %v571_v15 = vld [vmem:[%s1612_s4] sm:$0x3] }
  0x9e   : > { %683 = vmatprep.subr.mxu0 %v598_v31  ;;  %v576_v19 = vrot.slane %v571_v15, %v575_v14  ;;  %v580_v21 = vrot.slane %v571_v15, %v579_v16  ;;  %v651_v28 = vld [vmem:[%s1614_s6] sm:$0x3] }
  0x9f   : > { %684 = vmatpush1.msra.mxu0 %v597_v32  ;;  %v656_v29 = vrot.slane %v651_v28, %v575_v14  ;;  %v660_v30 = vrot.slane %v651_v28, %v579_v16 }
  0xa0   : > { %685 = vmatprep.subr.mxu0 %v596_v33 }
  0xa1   : > { %686 = vmatpush1.msra.mxu0 %v595_v34 }
  0xa2   : > { %687 = vmatprep.subr.mxu0 %v594_v35 }
  0xa3   : > { %688 = vmatpush1.msra.mxu0 %v593_v36 }
  0xa4   : > { %689 = vmatprep.subr.mxu0 %v592_v37 }
  0xa5   : > { %690 = vmatpush1.msra.mxu0 %v591_v38 }
  0xa6   : > { %691 = vmatprep.subr.mxu0 %v590_v39 }
  0xa7   : > { %692 = vmatpush1.msra.mxu0 %v589_v40 }
  0xa8   : > { %693 = vmatprep.subr.mxu0 %v588_v41 }
  0xa9   : > { %694 = vmatpush1.msra.mxu0 %v587_v42 }
  0xaa   : > { %695 = vmatprep.subr.mxu0 %v650_v43 }
  0xab   : > { %696 = vmatpush2.msra.mxu0 %v649_v44 }
  0xac   : > { %697 = vmatprep.subr.mxu0 %v648_v45 }
  0xad   : > { %698 = vmatpush2.msra.mxu0 %v647_v46 }
  0xae   : > { %699 = vmatprep.subr.mxu0 %v646_v47 }
  0xaf   : > { %700 = vmatpush2.msra.mxu0 %v645_v48 }
  0xb0   : > { %701 = vmatprep.subr.mxu0 %v644_v49 }
  0xb1   : > { %702 = vmatpush2.msra.mxu0 %v643_v50 }
  0xb2   : > { %703 = vmatprep.subr.mxu0 %v642_v51 }
  0xb3   : > { %704 = vmatpush2.msra.mxu0 %v641_v52 }
  0xb4   : > { %705 = vmatprep.subr.mxu0 %v640_v53 }
  0xb5   : > { %706 = vmatpush2.msra.mxu0 %v639_v54 }
  0xb6   : > { %707 = vmatprep.subr.mxu0 %v638_v55 }
  0xb7   : > { %708 = vmatpush2.msra.mxu0 %v637_v56 }
  0xb8   : > { %709 = vmatprep.subr.mxu0 %v636_v57 }
  0xb9   : > { %710 = vmatpush2.msra.mxu0 %v635_v58 }
  0xba   : > { %711 = vmatprep.subr.mxu0 %v634_v59 }
  0xbb   : > { %712 = vmatpush2.msra.mxu0 %v633_v60 }
  0xbc   : > { %713 = vmatprep.subr.mxu0 %v632_v61 }
  0xbd   : > { %714 = vmatpush2.msra.mxu0 %v631_v62 }
  0xbe   : > { %715 = vmatprep.subr.mxu0 %v630_v63 }
  0xbf   : > { %716 = vmatpush2.msra.mxu0 %v629_v0 }
  0xc0   : > { %717 = vmatprep.subr.mxu0 %v628_v1 }
  0xc1   : > { %718 = vmatpush2.msra.mxu0 %v627_v2 }
  0xc2   : > { %719 = vmatprep.subr.mxu0 %v626_v3 }
  0xc3   : > { %720 = vmatpush2.msra.mxu0 %v625_v4 }
  0xc4   : > { %721 = vmatprep.subr.mxu0 %v624_v5 }
  0xc5   : > { %722 = vmatpush2.msra.mxu0 %v623_v6 }
  0xc6   : > { %723 = vmatprep.subr.mxu0 %v622_v7 }
  0xc7   : > { %724 = vmatpush2.msra.mxu0 %v621_v8 }
  0xc8   : > { %725 = vmatprep.subr.mxu0 %v620_v9 }
  0xc9   : > { %726 = vmatpush2.msra.mxu0 %v619_v10 }
 0x149   : > { %v492_v13 = vpop.f32.mrf.mxu1 }
 0x14b   : > { %v494_v17 = vpop.f32.mrf.mxu1 }
 0x14d   : > { %v566_v18 = vpop.f32.mrf.mxu1 }
 0x14e   : > { %v567_v20 = vadd.f32 %v566_v18, %v492_v13 }
 0x14f   : > { %v568_v22 = vpop.f32.mrf.mxu1 }
 0x150   : > { %v569_v23 = vadd.f32 %v568_v22, %v494_v17  ;;  %v583_v24 = vadd.f32 %v576_v19, %v567_v20 }
 0x152   : > { %v584_v25 = vadd.f32 %v580_v21, %v569_v23  ;;  %v585_v27 = vmax.f32 %v583_v24, 0.0 }
 0x154   : > { %v586_v26 = vmax.f32 %v584_v25, 0.0 }
 0x156   : > { %727 = vmatprep.mubr.f32.mxu0 %v586_v26 }
 0x157   : > { %728 = vmatmul.mubr.f32.vlgmr.msra.gmra.mxu0 %v585_v27 }
 0x217   : > { %v729_v31 = vpop.f32.mrf.mxu0 }
 0x218   : > { %v730_v32 = vadd.f32 %v729_v31, %v656_v29 }
 0x219   : > { %v731_v33 = vpop.f32.mrf.mxu0 }
 0x21a   : > { %734 = vst [vmem:[%s404_s21] sm:$0xff] %v730_v32  ;;  %v732_v34 = vadd.f32 %v731_v33, %v660_v30 }
 0x21b   : > { %1188 = shalt.err (!%p1185_p8)
}
 0x21c   : > { %s1189_s19 = scalar_lea.hbm %s1540_s17, 128  ;;  %s1193_s16 = scalar_lea.hbm %s1615_s7, 256 }
 0x21d   : > { %p1190_p10 = scmp.ne.s32.totalorder %s1540_s17, %s1189_s19  ;;  %p1194_p2 = scmp.lt.s32.totalorder %s1540_s17, %s1615_s7 }
 0x21e   : > { %p1195_p4 = scmp.lt.s32.totalorder %s1193_s16, %s1189_s19 }
 0x21f   : > { %p1191_p1 = pnand %p1190_p10, %p1643_p0 }
 0x220   : > { %p1196_p6 = por %p1195_p4, %p1194_p2 }
 0x221   : > { %p1192_p11 = pneg %p1191_p1 }
 0x223   : > { %p1197_p12 = pnand %p1196_p6, %p1192_p11 }
 0x225   : > { %1200 = shalt.err (!%p1197_p12)
}
 0x226   : > { %965 = dma.vmem_to_hbm [thread:$0]  (%p1643_p0), %s1542_s3, 128, %s1540_s17, %s739_s22   ;;  %v735_v35 = vmul.f32 1.442695, %v732_v34 }
 0x227   : > { %s411_s20 = scalar_lea.vmem [#allocation12], %s1501_s29  ;;  %s1571_s2 = scalar_lea.hbm %s1616_s8, %s945_s10 }
 0x228   : > { %1039 = vpow2.f32 %v735_v35  ;;  %s770_s14 = sshll.u32 %s411_s20, 4  ;;  %s744_s13 = scalar_lea.sflag [#allocation13], %s1498_s5  ;;  %s771_s14 = int_to_ptr.vmem [resolvable:$true] %s770_s14 }
 0x229   : > { %s1201_s19 = scalar_lea.vmem %s771_s14, 128  ;;  %s1292_s3 = smov [#allocation12]  }
 0x22a   : > { %p1202_p5 = scmp.ne.s32.totalorder %s771_s14, %s1201_s19  ;;  %s1205_s17 = sshll.u32 %s1292_s3, 4  ;;  %s1206_s17 = int_to_ptr.vmem [resolvable:$false] %s1205_s17 }
 0x22b   : > { %s1207_s29 = scalar_lea.vmem %s1206_s17, 256  ;;  %p1208_p9 = scmp.lt.s32.totalorder %s771_s14, %s1206_s17 }
 0x22c   : > { %p1203_p3 = pnand %p1202_p5, %p1643_p0  ;;  %p1209_p13 = scmp.lt.s32.totalorder %s1207_s29, %s1201_s19 }
 0x22e   : > { %p1204_p7 = pneg %p1203_p3  ;;  %p1210_p8 = por %p1209_p13, %p1208_p9 }
 0x230   : > { %p1211_p10 = pnand %p1210_p8, %p1204_p7 }
 0x235   : > { %v1040_v36 = vpop.eup %1039 }
 0x236   : > { %737 = vst [vmem:[%s411_s20] sm:$0xff] %v1040_v36 }
 0x237   : > { %1214 = shalt.err (!%p1211_p10)
}
 0x238   : > { %s1215_s9 = scalar_lea.hbm %s1571_s2, 128  ;;  %s1219_s22 = scalar_lea.hbm %s1616_s8, 256 }
 0x239   : > { %p1216_p1 = scmp.ne.s32.totalorder %s1571_s2, %s1215_s9  ;;  %p1220_p4 = scmp.lt.s32.totalorder %s1571_s2, %s1616_s8 }
 0x23a   : > { %p1221_p6 = scmp.lt.s32.totalorder %s1219_s22, %s1215_s9 }
 0x23b   : > { %p1217_p11 = pnand %p1216_p1, %p1643_p0 }
 0x23c   : > { %p1222_p12 = por %p1221_p6, %p1220_p4 }
 0x23d   : > { %p1218_p2 = pneg %p1217_p11 }
 0x23f   : > { %p1223_p5 = pnand %p1222_p12, %p1218_p2 }
 0x241   : > { %1226 = shalt.err (!%p1223_p5)
}
 0x242   : > { %966 = dma.vmem_to_hbm [thread:$0]  (%p1643_p0), %s771_s14, 128, %s1571_s2, %s744_s13  }
 0x243 PF: > { %s782_s16 = sand.u32 1, %s1269_s27   ;;  %p1644_p3 = scmp.ne.s32.totalorder %s1627_s12, 0 }
 0x244   : > { %p1645_p7 = scmp.ge.s32.totalorder %s1281_s30, 2  ;;  %s783_s26 = scalar_lea.sflag [#allocation4], %s782_s16 }
 0x246   : > { %p987_p9 = pnand %p1645_p7, %p1644_p3 }
 0x248   : > { %p988_p13 = pneg %p987_p9 }
 0x24a   : > { %1260 = dma.done.wait (%p988_p13), %s783_s26, 128  }
 0x24b   : > { %1262 = vsyncadd (%p988_p13), %s783_s26, 4294967168  ;;  %s792_s21 = scalar_lea.sflag [#allocation13], %s782_s16 }
 0x24c   : > { %1264 = dma.done.wait (%p988_p13), %s792_s21, 128  }
 0x24d   : > { %1266 = vsyncadd (%p988_p13), %s792_s21, 4294967168  ;;  %s1646_s25 = sld [smem:[#allocation20_spill]]  ;;  %p29_p0 = scmp.ge.s32.totalorder %s1418_s18, 4  }
 0x24e   : > { %s1647_s29 = sld [smem:[#allocation21_spill]]  ;;  %s1648_s27 = smov %s1273_s28 }
 0x24f   : > { %s1650_s30 = smov %s1418_s18  ;;  %31 = sbr.rel (!%p29_p0) target bundleno = 14 (0xe), region = 135 }
 0x253   : > { %s1649_s28 = smov %s1646_s25 }
 0x254   :  { %797 = vsyncpa [#allocation3], 1 }
 0x255   :  { %799 = vsyncpa [#allocation3 + $0x1], 1 }
 0x256   :  { %800 = vsyncpa [#allocation6], 1 }
 0x257   :  { %802 = vsyncpa [#allocation6 + $0x1], 1 }
 0x258   :  { %803 = vsyncpa [#allocation9], 1 }
 0x259   :  { %804 = vsyncpa [#allocation4], 1 }
 0x25a   :  { %806 = vsyncpa [#allocation4 + $0x1], 1 }
 0x25b   :  { %807 = vsyncpa [#allocation13], 1 }
 0x25c   :  { %809 = vsyncpa [#allocation13 + $0x1], 1 }

</bundles_post_ra>
